<compile_context>
chip_gen: v7x
topology: tpu7x:2x2x1
jax: 0.10.0
libtpu: 0.0.40
codegen_flags: <defaults>
</compile_context>

<pallas_src>
import functools

import jax
import jax.numpy as jnp
from jax.experimental import pallas as pl
from jax.experimental.pallas import tpu as pltpu


def _mlp_kernel(x_ref, w1_ref, b1_ref, w2_ref, b2_ref, o_ref, *, fold_seq):
    # x_ref : (TB, S*F) bf16   (fold_seq)  or (TB, S, F) bf16
    # w1_ref: (S*F, H)  bf16   (pre-scaled by 1/S, stacked)  or (F, H) bf16
    # b1_ref: (1, H)    f32
    # w2_ref: (H, O_pad) bf16, zero-padded columns
    # b2_ref: (1, O_pad) f32, -1e30 in padded columns
    # o_ref : (TB, O_pad) f32
    if fold_seq:
        xs = x_ref[...]                                      # lane-dense (TB, S*F)
    else:
        # mean(dim=1) is folded into w1 (= w1/S); only the sum happens here.
        xs = jnp.sum(x_ref[...].astype(jnp.float32), axis=1).astype(w1_ref.dtype)

    # linear1 (+ bias) + ReLU: bf16 MXU, f32 accumulation, f32 VPU math.
    h = jnp.dot(xs, w1_ref[...], preferred_element_type=jnp.float32)
    h = jnp.maximum(h + b1_ref[...], 0.0)                    # (TB, H) f32

    # Dropout: inference/eval mode -> identity.
    # TODO(synk): training-mode dropout (PRNG mask + 1/(1-p) scale) not emitted.

    # linear2: padded bias columns are -1e30 so softmax assigns them exactly 0.
    logits = jnp.dot(h.astype(w2_ref.dtype), w2_ref[...],
                     preferred_element_type=jnp.float32)
    logits = logits + b2_ref[...]                            # (TB, O_pad) f32

    # numerically stable softmax over the last (lane) dim, all in f32.
    m = jnp.max(logits, axis=-1, keepdims=True)
    e = jnp.exp(logits - m)
    inv = pl.reciprocal(jnp.sum(e, axis=-1, keepdims=True), approx=True)
    o_ref[...] = (e * inv).astype(o_ref.dtype)


def _round_up(x, m):
    return ((x + m - 1) // m) * m


def _pick_block_b(B, x_row_bytes, out_row_bytes, weight_bytes,
                  vmem_budget=24 * 1024 * 1024):
    """Largest multiple-of-8 batch tile (<=1024 rows) whose double-buffered
    x/out tiles plus resident weights fit the VMEM budget; capped near B/2 so
    the 'parallel' batch grid has >=2 steps (v7x megacore)."""
    if B <= 8:
        return B
    cap = min(1024, (B // 8) * 8)
    if B >= 16:
        cap = min(cap, max(8, _round_up(pl.cdiv(B, 2), 8)))
    per_row = 2 * (x_row_bytes + out_row_bytes)              # double-buffered tiles
    fit = max(8, ((max(vmem_budget - weight_bytes, per_row * 8) // per_row) // 8) * 8)
    bb = min(cap, fit)
    return B if bb >= B else bb


def simple_mlp_forward(x, w1, b1, w2, b2, *, block_b=None,
                       compute_dtype=jnp.bfloat16):
    """x: (B, S, F) f32; w1: (F, H); b1: (H,); w2: (H, O); b2: (O,).

    Weights are stored pre-transposed (in, out), so y = x @ W + b
    (equivalent to nn.Linear's x @ W.T + b)."""
    B, S, F = x.shape
    H = w1.shape[1]
    O = w2.shape[1]
    inv_s = 1.0 / S

    # ---- wrapper-side layout plumbing (one-shot XLA ops, not in-kernel) ----
    # Lane-dense, MXU-friendly output padding: zero weight cols, -1e30 bias.
    O_pad = _round_up(O, 128)
    w2p = jnp.zeros((H, O_pad), compute_dtype).at[:, :O].set(w2.astype(compute_dtype))
    b2p = jnp.full((1, O_pad), -1e30, jnp.float32).at[0, :O].set(b2.astype(jnp.float32))
    b1_2d = b1.reshape(1, H).astype(jnp.float32)

    # Fold mean(dim=1) into w1.  If the stacked (S*F, H) weight still fits
    # comfortably in VMEM, flatten x to (B, S*F) for a lane-dense tile and a
    # K=S*F MXU pass; otherwise keep (B, S, F) and sum over S in-kernel.
    itemsize = jnp.dtype(compute_dtype).itemsize
    fold_seq = S * F * H * itemsize <= 8 * 1024 * 1024
    if fold_seq:
        SF = S * F
        x_in = x.reshape(B, SF).astype(compute_dtype)
        w1_in = jnp.tile((w1 * inv_s).astype(compute_dtype), (S, 1))  # (S*F, H)
        x_block = (None, SF)          # first entry filled with block_b below
        x_index = lambda i: (i, 0)
        x_row_bytes = SF * itemsize
    else:
        x_in = x.astype(compute_dtype)
        w1_in = (w1 * inv_s).astype(compute_dtype)                    # (F, H)
        x_block = (None, S, F)
        x_index = lambda i: (i, 0, 0)
        x_row_bytes = S * F * itemsize

    weight_bytes = (w1_in.size * w1_in.dtype.itemsize
                    + w2p.size * w2p.dtype.itemsize
                    + b1_2d.size * 4 + b2p.size * 4)
    out_row_bytes = O_pad * 4

    if block_b is None:
        block_b = _pick_block_b(B, x_row_bytes, out_row_bytes, weight_bytes)
    block_b = B if block_b >= B else max(8, (block_b // 8) * 8)
    x_block = (block_b,) + x_block[1:]

    # Ragged last block: rows past B are undefined on read and masked on write.
    grid = (pl.cdiv(B, block_b),)

    est_vmem = 2 * block_b * (x_row_bytes + out_row_bytes) + weight_bytes
    vmem_limit = None
    if est_vmem > 12 * 1024 * 1024:        # above v5e's 16 MiB scoped default
        vmem_limit = min(50 * 1024 * 1024, int(1.5 * est_vmem))

    cost = pl.CostEstimate(
        flops=2 * B * (S * F * H + H * O_pad),
        transcendentals=B * O_pad,
        bytes_accessed=(x_in.size * x_in.dtype.itemsize + weight_bytes
                        + B * O_pad * 4),
    )

    kernel = functools.partial(_mlp_kernel, fold_seq=fold_seq)

    def run(single_buffer_weights):
        def w_spec(arr):
            ndim = arr.ndim
            kwargs = {}
            if single_buffer_weights and hasattr(pl, "Buffered"):
                # grid-invariant operands: keep a single resident buffer
                kwargs["pipeline_mode"] = pl.Buffered(1)
            return pl.BlockSpec(arr.shape, lambda i: (0,) * ndim, **kwargs)

        return pl.pallas_call(
            kernel,
            out_shape=jax.ShapeDtypeStruct((B, O_pad), jnp.float32),
            grid=grid,
            in_specs=[
                # x tiles stream through VMEM (double-buffered behind compute)
                pl.BlockSpec(x_block, x_index),
                # grid-invariant weights/biases stay resident
                w_spec(w1_in),
                w_spec(b1_2d),
                w_spec(w2p),
                w_spec(b2p),
            ],
            out_specs=pl.BlockSpec((block_b, O_pad), lambda i: (i, 0)),
            compiler_params=pltpu.CompilerParams(
                dimension_semantics=("parallel",),
                vmem_limit_bytes=vmem_limit,
            ),
            cost_estimate=cost,
        )(x_in, w1_in, b1_2d, w2p, b2p)

    try:
        out = run(True)
    except Exception:
        # pl.Buffered(1) not supported on this jax build -> plain double-buffer
        out = run(False)

    # Strip lane padding back to the real output columns.
    return out[:, :O]


def init_params(key, in_features, hidden_size=256, out_features=2):
    """Deterministic nn.Linear-style init: uniform(-1/sqrt(fan_in), 1/sqrt(fan_in))."""
    k1, k2, k3, k4 = jax.random.split(key, 4)
    bound1 = 1.0 / jnp.sqrt(in_features)
    bound2 = 1.0 / jnp.sqrt(hidden_size)
    # Stored pre-transposed: (in, out)
    w1 = jax.random.uniform(k1, (in_features, hidden_size), jnp.float32, -bound1, bound1)
    b1 = jax.random.uniform(k2, (hidden_size,), jnp.float32, -bound1, bound1)
    w2 = jax.random.uniform(k3, (hidden_size, out_features), jnp.float32, -bound2, bound2)
    b2 = jax.random.uniform(k4, (out_features,), jnp.float32, -bound2, bound2)
    return w1, b1, w2, b2


if __name__ == "__main__":
    key = jax.random.PRNGKey(0)
    k_x, k_p = jax.random.split(key)

    B, S, F, H, O = 2, 8, 32, 256, 2
    x = jax.random.normal(k_x, (B, S, F), dtype=jnp.float32)
    w1, b1, w2, b2 = init_params(k_p, in_features=F, hidden_size=H, out_features=O)

    out = simple_mlp_forward(x, w1, b1, w2, b2)
    out = jax.block_until_ready(out)

    # reference in plain f32 JAX (exact mean / exact divide)
    xm = x.mean(axis=1)
    h = jnp.maximum(xm @ w1 + b1, 0.0)
    ref = jax.nn.softmax(h @ w2 + b2, axis=-1)

    assert out.shape == (B, O)
    # bf16 streaming + approx reciprocal on the softmax denom -> loose tolerance
    assert jnp.allclose(out, ref, atol=5e-3, rtol=5e-3)
    assert jnp.allclose(out.sum(axis=-1), 1.0, atol=5e-3)

    print("KERNEL_OK")
</pallas_src>

<mosaic_0001>
module attributes {stable_mosaic.version = 11 : i64} {
  func.func @_mlp_kernel(%arg0: i32, %arg1: memref<2x256xbf16, #tpu.memory_space<vmem>>, %arg2: memref<256x256xbf16, #tpu.memory_space<vmem>>, %arg3: memref<1x256xf32, #tpu.memory_space<vmem>>, %arg4: memref<256x128xbf16, #tpu.memory_space<vmem>>, %arg5: memref<1x128xf32, #tpu.memory_space<vmem>>, %arg6: memref<2x128xf32, #tpu.memory_space<vmem>>) attributes {dimension_semantics = [#tpu.dimension_semantics<parallel>], iteration_bounds = array<i64: 1>, scalar_prefetch = 0 : i64, scratch_operands = 0 : i64, tpu.core_type = #tpu.core_type<tc>, window_params = [{transform_indices = @transform_0, window_bounds = array<i64: 2, 256>}, {pipeline_mode = #tpu.pipeline_mode<synchronous>, transform_indices = @transform_1, window_bounds = array<i64: 256, 256>}, {pipeline_mode = #tpu.pipeline_mode<synchronous>, transform_indices = @transform_2, window_bounds = array<i64: 1, 256>}, {pipeline_mode = #tpu.pipeline_mode<synchronous>, transform_indices = @transform_3, window_bounds = array<i64: 256, 128>}, {pipeline_mode = #tpu.pipeline_mode<synchronous>, transform_indices = @transform_4, window_bounds = array<i64: 1, 128>}, {transform_indices = @transform_5, window_bounds = array<i64: 2, 128>}]} {
    %c0 = arith.constant 0 : index
    %c0_0 = arith.constant 0 : index
    %0 = vector.load %arg1[%c0, %c0_0] : memref<2x256xbf16, #tpu.memory_space<vmem>>, vector<2x256xbf16>
    %c0_1 = arith.constant 0 : index
    %c0_2 = arith.constant 0 : index
    %1 = vector.load %arg2[%c0_1, %c0_2] : memref<256x256xbf16, #tpu.memory_space<vmem>>, vector<256x256xbf16>
    %cst = arith.constant dense<0.000000e+00> : vector<2x256xf32>
    %2 = tpu.matmul %0, %1, %cst {dimension_numbers = #tpu.dot_dimension_numbers<[1], [0], [0], [1], [0, 0, 1, 1], [], []>} : vector<2x256xbf16>, vector<256x256xbf16>, vector<2x256xf32> -> vector<2x256xf32>
    %c0_3 = arith.constant 0 : index
    %c0_4 = arith.constant 0 : index
    %3 = vector.load %arg3[%c0_3, %c0_4] : memref<1x256xf32, #tpu.memory_space<vmem>>, vector<1x256xf32>
    %4 = vector.broadcast %3 : vector<1x256xf32> to vector<2x256xf32>
    %5 = arith.addf %2, %4 : vector<2x256xf32>
    %cst_5 = arith.constant 0.000000e+00 : f32
    %6 = vector.broadcast %cst_5 : f32 to vector<2x256xf32>
    %7 = arith.maximumf %5, %6 : vector<2x256xf32>
    %8 = arith.truncf %7 : vector<2x256xf32> to vector<2x256xbf16>
    %c0_6 = arith.constant 0 : index
    %c0_7 = arith.constant 0 : index
    %9 = vector.load %arg4[%c0_6, %c0_7] : memref<256x128xbf16, #tpu.memory_space<vmem>>, vector<256x128xbf16>
    %cst_8 = arith.constant dense<0.000000e+00> : vector<2x128xf32>
    %10 = tpu.matmul %8, %9, %cst_8 {dimension_numbers = #tpu.dot_dimension_numbers<[1], [0], [0], [1], [0, 0, 1, 1], [], []>} : vector<2x256xbf16>, vector<256x128xbf16>, vector<2x128xf32> -> vector<2x128xf32>
    %c0_9 = arith.constant 0 : index
    %c0_10 = arith.constant 0 : index
    %11 = vector.load %arg5[%c0_9, %c0_10] : memref<1x128xf32, #tpu.memory_space<vmem>>, vector<1x128xf32>
    %12 = vector.broadcast %11 : vector<1x128xf32> to vector<2x128xf32>
    %13 = arith.addf %10, %12 : vector<2x128xf32>
    %cst_11 = arith.constant dense<0xFF800000> : vector<2xf32>
    %14 = vector.multi_reduction <maximumf>, %13, %cst_11 [1] : vector<2x128xf32> to vector<2xf32>
    %15 = vector.shape_cast %14 : vector<2xf32> to vector<2x1xf32>
    %16 = vector.broadcast %15 : vector<2x1xf32> to vector<2x128xf32>
    %17 = arith.subf %13, %16 : vector<2x128xf32>
    %18 = math.exp %17 : vector<2x128xf32>
    %cst_12 = arith.constant dense<0.000000e+00> : vector<2xf32>
    %19 = vector.multi_reduction <add>, %18, %cst_12 [1] : vector<2x128xf32> to vector<2xf32>
    %20 = vector.shape_cast %19 : vector<2xf32> to vector<2x1xf32>
    %21 = tpu.reciprocal %20 {approx = true} : vector<2x1xf32> -> vector<2x1xf32>
    %22 = vector.broadcast %21 : vector<2x1xf32> to vector<2x128xf32>
    %23 = arith.mulf %18, %22 : vector<2x128xf32>
    %c0_13 = arith.constant 0 : index
    %c0_14 = arith.constant 0 : index
    %24 = vector.load %arg6[%c0_13, %c0_14] : memref<2x128xf32, #tpu.memory_space<vmem>>, vector<2x128xf32>
    tpu.vector_store %arg6[%c0_13, %c0_14], %23 {strides = array<i32>} : memref<2x128xf32, #tpu.memory_space<vmem>>, vector<2x128xf32>,
    return
  }
  func.func @transform_0(%arg0: i32) -> (i32, i32) {
    %c0_i32 = arith.constant 0 : i32
    %c0_i32_0 = arith.constant 0 : i32
    return %arg0, %c0_i32 : i32, i32
  }
  func.func @transform_1(%arg0: i32) -> (i32, i32) {
    %c0_i32 = arith.constant 0 : i32
    %c0_i32_0 = arith.constant 0 : i32
    %c0_i32_1 = arith.constant 0 : i32
    return %c0_i32, %c0_i32_0 : i32, i32
  }
  func.func @transform_2(%arg0: i32) -> (i32, i32) {
    %c0_i32 = arith.constant 0 : i32
    %c0_i32_0 = arith.constant 0 : i32
    %c0_i32_1 = arith.constant 0 : i32
    return %c0_i32, %c0_i32_0 : i32, i32
  }
  func.func @transform_3(%arg0: i32) -> (i32, i32) {
    %c0_i32 = arith.constant 0 : i32
    %c0_i32_0 = arith.constant 0 : i32
    %c0_i32_1 = arith.constant 0 : i32
    return %c0_i32, %c0_i32_0 : i32, i32
  }
  func.func @transform_4(%arg0: i32) -> (i32, i32) {
    %c0_i32 = arith.constant 0 : i32
    %c0_i32_0 = arith.constant 0 : i32
    %c0_i32_1 = arith.constant 0 : i32
    return %c0_i32, %c0_i32_0 : i32, i32
  }
  func.func @transform_5(%arg0: i32) -> (i32, i32) {
    %c0_i32 = arith.constant 0 : i32
    %c0_i32_0 = arith.constant 0 : i32
    return %arg0, %c0_i32 : i32, i32
  }
}

module attributes {stable_mosaic.version = 11 : i64} {
  func.func @_mlp_kernel(%arg0: i32, %arg1: memref<2x256xbf16, #tpu.memory_space<vmem>>, %arg2: memref<256x256xbf16, #tpu.memory_space<vmem>>, %arg3: memref<1x256xf32, #tpu.memory_space<vmem>>, %arg4: memref<256x128xbf16, #tpu.memory_space<vmem>>, %arg5: memref<1x128xf32, #tpu.memory_space<vmem>>, %arg6: memref<2x128xf32, #tpu.memory_space<vmem>>) attributes {dimension_semantics = [#tpu.dimension_semantics<parallel>], iteration_bounds = array<i64: 1>, scalar_prefetch = 0 : i64, scratch_operands = 0 : i64, tpu.core_type = #tpu.core_type<tc>, window_params = [{transform_indices = @transform_0, window_bounds = array<i64: 2, 256>}, {pipeline_mode = #tpu.pipeline_mode<synchronous>, transform_indices = @transform_1, window_bounds = array<i64: 256, 256>}, {pipeline_mode = #tpu.pipeline_mode<synchronous>, transform_indices = @transform_2, window_bounds = array<i64: 1, 256>}, {pipeline_mode = #tpu.pipeline_mode<synchronous>, transform_indices = @transform_3, window_bounds = array<i64: 256, 128>}, {pipeline_mode = #tpu.pipeline_mode<synchronous>, transform_indices = @transform_4, window_bounds = array<i64: 1, 128>}, {transform_indices = @transform_5, window_bounds = array<i64: 2, 128>}]} {
    %c0 = arith.constant 0 : index
    %c0_0 = arith.constant 0 : index
    %0 = vector.load %arg1[%c0, %c0_0] : memref<2x256xbf16, #tpu.memory_space<vmem>>, vector<2x256xbf16>
    %c0_1 = arith.constant 0 : index
    %c0_2 = arith.constant 0 : index
    %1 = vector.load %arg2[%c0_1, %c0_2] : memref<256x256xbf16, #tpu.memory_space<vmem>>, vector<256x256xbf16>
    %cst = arith.constant dense<0.000000e+00> : vector<2x256xf32>
    %2 = tpu.matmul %0, %1, %cst {dimension_numbers = #tpu.dot_dimension_numbers<[1], [0], [0], [1], [0, 0, 1, 1], [], []>} : vector<2x256xbf16>, vector<256x256xbf16>, vector<2x256xf32> -> vector<2x256xf32>
    %c0_3 = arith.constant 0 : index
    %c0_4 = arith.constant 0 : index
    %3 = vector.load %arg3[%c0_3, %c0_4] : memref<1x256xf32, #tpu.memory_space<vmem>>, vector<1x256xf32>
    %4 = vector.broadcast %3 : vector<1x256xf32> to vector<2x256xf32>
    %5 = arith.addf %2, %4 : vector<2x256xf32>
    %cst_5 = arith.constant 0.000000e+00 : f32
    %6 = vector.broadcast %cst_5 : f32 to vector<2x256xf32>
    %7 = arith.maximumf %5, %6 : vector<2x256xf32>
    %8 = arith.truncf %7 : vector<2x256xf32> to vector<2x256xbf16>
    %c0_6 = arith.constant 0 : index
    %c0_7 = arith.constant 0 : index
    %9 = vector.load %arg4[%c0_6, %c0_7] : memref<256x128xbf16, #tpu.memory_space<vmem>>, vector<256x128xbf16>
    %cst_8 = arith.constant dense<0.000000e+00> : vector<2x128xf32>
    %10 = tpu.matmul %8, %9, %cst_8 {dimension_numbers = #tpu.dot_dimension_numbers<[1], [0], [0], [1], [0, 0, 1, 1], [], []>} : vector<2x256xbf16>, vector<256x128xbf16>, vector<2x128xf32> -> vector<2x128xf32>
    %c0_9 = arith.constant 0 : index
    %c0_10 = arith.constant 0 : index
    %11 = vector.load %arg5[%c0_9, %c0_10] : memref<1x128xf32, #tpu.memory_space<vmem>>, vector<1x128xf32>
    %12 = vector.broadcast %11 : vector<1x128xf32> to vector<2x128xf32>
    %13 = arith.addf %10, %12 : vector<2x128xf32>
    %cst_11 = arith.constant dense<0xFF800000> : vector<2xf32>
    %14 = vector.multi_reduction <maximumf>, %13, %cst_11 [1] : vector<2x128xf32> to vector<2xf32>
    %15 = vector.shape_cast %14 : vector<2xf32> to vector<2x1xf32>
    %16 = vector.broadcast %15 : vector<2x1xf32> to vector<2x128xf32>
    %17 = arith.subf %13, %16 : vector<2x128xf32>
    %18 = math.exp %17 : vector<2x128xf32>
    %cst_12 = arith.constant dense<0.000000e+00> : vector<2xf32>
    %19 = vector.multi_reduction <add>, %18, %cst_12 [1] : vector<2x128xf32> to vector<2xf32>
    %20 = vector.shape_cast %19 : vector<2xf32> to vector<2x1xf32>
    %21 = tpu.reciprocal %20 {approx = true} : vector<2x1xf32> -> vector<2x1xf32>
    %22 = vector.broadcast %21 : vector<2x1xf32> to vector<2x128xf32>
    %23 = arith.mulf %18, %22 : vector<2x128xf32>
    %c0_13 = arith.constant 0 : index
    %c0_14 = arith.constant 0 : index
    %24 = vector.load %arg6[%c0_13, %c0_14] : memref<2x128xf32, #tpu.memory_space<vmem>>, vector<2x128xf32>
    tpu.vector_store %arg6[%c0_13, %c0_14], %23 {strides = array<i32>} : memref<2x128xf32, #tpu.memory_space<vmem>>, vector<2x128xf32>,
    return
  }
  func.func @transform_0(%arg0: i32) -> (i32, i32) {
    %c0_i32 = arith.constant 0 : i32
    %c0_i32_0 = arith.constant 0 : i32
    return %arg0, %c0_i32 : i32, i32
  }
  func.func @transform_1(%arg0: i32) -> (i32, i32) {
    %c0_i32 = arith.constant 0 : i32
    %c0_i32_0 = arith.constant 0 : i32
    %c0_i32_1 = arith.constant 0 : i32
    return %c0_i32, %c0_i32_0 : i32, i32
  }
  func.func @transform_2(%arg0: i32) -> (i32, i32) {
    %c0_i32 = arith.constant 0 : i32
    %c0_i32_0 = arith.constant 0 : i32
    %c0_i32_1 = arith.constant 0 : i32
    return %c0_i32, %c0_i32_0 : i32, i32
  }
  func.func @transform_3(%arg0: i32) -> (i32, i32) {
    %c0_i32 = arith.constant 0 : i32
    %c0_i32_0 = arith.constant 0 : i32
    %c0_i32_1 = arith.constant 0 : i32
    return %c0_i32, %c0_i32_0 : i32, i32
  }
  func.func @transform_4(%arg0: i32) -> (i32, i32) {
    %c0_i32 = arith.constant 0 : i32
    %c0_i32_0 = arith.constant 0 : i32
    %c0_i32_1 = arith.constant 0 : i32
    return %c0_i32, %c0_i32_0 : i32, i32
  }
  func.func @transform_5(%arg0: i32) -> (i32, i32) {
    %c0_i32 = arith.constant 0 : i32
    %c0_i32_0 = arith.constant 0 : i32
    return %arg0, %c0_i32 : i32, i32
  }
}

</mosaic_0001>

<bundles_post_ra>
// kernel: tpu_custom_call.1
= control target key start
LH: loop header
LB: loop body
LE: loop exit
PB: predicated region body
PF: predicated region fallthrough
CT: control target
= control target key end

     0   :  { %10 = vsyncpa [#allocation3], 0  ;;  %s890_s0 = inlined_call_operand.hbm [shape: bf16[2,256], index: 0, kind: input, shape index: {}]   ;;  %s891_s1 = inlined_call_operand.hbm [shape: bf16[256,256], index: 1, kind: input, shape index: {}]   ;;  %s892_s2 = inlined_call_operand.vmem [shape: f32[1,256], index: 2, kind: input, shape index: {}]   ;;  %s893_s3 = inlined_call_operand.hbm [shape: bf16[256,128], index: 3, kind: input, shape index: {}]   ;;  %s894_s4 = inlined_call_operand.vmem [shape: f32[1,128], index: 4, kind: input, shape index: {}]   ;;  %s895_s5 = inlined_call_operand.hbm [shape: f32[2,128], index: 5, kind: output, shape index: {}]  }
   0x1   :  { %11 = vsyncpa [#allocation6], 0 }
   0x2   :  { %12 = vsyncpa [#allocation4], 0  ;;  %s783_s18 = smov [#allocation5]   ;;  %s689_s22 = scalar_lea.hbm %s891_s1, 4096 }
   0x3   :  { %s28_s19 = sshll.u32 %s783_s18, 4  ;;  %p690_p0 = scmp.ne.s32.totalorder %s891_s1, %s689_s22  ;;  %s29_s19 = int_to_ptr.vmem [resolvable:$true] %s28_s19 }
   0x4   :  { %p693_p1 = scmp.lt.u32.totalorder %s689_s22, %s891_s1 }
   0x6   :  { %p695_p2 = pnand %p693_p1, %p690_p0 }
   0x8   :  { %698 = shalt.err (!%p695_p2)
}
   0x9   :  { %s699_s27 = scalar_lea.vmem %s29_s19, 4096  ;;  %p704_p4 = scmp.lt.s32.totalorder %s29_s19, %s29_s19 }
   0xa   :  { %p700_p3 = scmp.ne.s32.totalorder %s29_s19, %s699_s27  ;;  %p705_p5 = scmp.lt.s32.totalorder %s699_s27, %s699_s27 }
   0xc   :  { %p706_p6 = por %p705_p5, %p704_p4 }
   0xe   :  { %p707_p7 = pnand %p706_p6, %p700_p3 }
  0x10   :  { %710 = shalt.err (!%p707_p7)
}
  0x11   :  { %s784_s28 = smov 128   ;;  %s785_s29 = smov 8  }
  0x12   :  { %34 = dma.hbm_to_vmem [thread:$0]  %s891_s1, 4096, %s29_s19, [#allocation6], %s784_s28, %s784_s28, %s785_s29  }
  0x13   :  { %s786_s7 = smov [#allocation2]   ;;  %s787_s9 = smov [#allocation7]  }
  0x14   :  { %s19_s8 = sshll.u32 %s786_s7, 4  ;;  %s42_s10 = sshll.u32 %s787_s9, 4  ;;  %s20_s8 = int_to_ptr.vmem [resolvable:$true] %s19_s8  ;;  %s43_s10 = int_to_ptr.vmem [resolvable:$true] %s42_s10 }
  0x15   :  { %s711_s13 = scalar_lea.hbm %s890_s0, 32 }
  0x16   :  { %p712_p8 = scmp.ne.s32.totalorder %s890_s0, %s711_s13  ;;  %p715_p9 = scmp.lt.u32.totalorder %s711_s13, %s890_s0 }
  0x18   :  { %p717_p10 = pnand %p715_p9, %p712_p8 }
  0x1a   :  { %720 = shalt.err (!%p717_p10)
}
  0x1b   :  { %s721_s1 = scalar_lea.vmem %s20_s8, 32  ;;  %p726_p12 = scmp.lt.s32.totalorder %s20_s8, %s20_s8 }
  0x1c   :  { %p722_p11 = scmp.ne.s32.totalorder %s20_s8, %s721_s1  ;;  %p727_p13 = scmp.lt.s32.totalorder %s721_s1, %s721_s1 }
  0x1e   :  { %p728_p0 = por %p727_p13, %p726_p12 }
  0x20   :  { %p729_p1 = pnand %p728_p0, %p722_p11 }
  0x22   :  { %732 = shalt.err (!%p729_p1)
}
  0x23   :  { %22 = dma.hbm_to_vmem [thread:$0]  %s890_s0, 32, %s20_s8, [#allocation3]  }
  0x24   :  { %s733_s22 = scalar_lea.hbm %s893_s3, 2048 }
  0x25   :  { %p734_p2 = scmp.ne.s32.totalorder %s893_s3, %s733_s22  ;;  %p737_p3 = scmp.lt.u32.totalorder %s733_s22, %s893_s3 }
  0x27   :  { %p739_p4 = pnand %p737_p3, %p734_p2 }
  0x29   :  { %742 = shalt.err (!%p739_p4)
}
  0x2a   :  { %s743_s27 = scalar_lea.vmem %s43_s10, 2048  ;;  %p748_p6 = scmp.lt.s32.totalorder %s43_s10, %s43_s10 }
  0x2b   :  { %p744_p5 = scmp.ne.s32.totalorder %s43_s10, %s743_s27  ;;  %p749_p7 = scmp.lt.s32.totalorder %s743_s27, %s743_s27 }
  0x2d   :  { %p750_p8 = por %p749_p7, %p748_p6 }
  0x2f   :  { %p751_p9 = pnand %p750_p8, %p744_p5 }
  0x31   :  { %754 = shalt.err (!%p751_p9)
}
  0x32   :  { %s788_s0 = smov 64   ;;  %s789_s28 = smov 4  }
  0x33   :  { %48 = dma.hbm_to_vmem [thread:$0]  %s893_s3, 2048, %s43_s10, [#allocation6], %s788_s0, %s788_s0, %s789_s28  }
  0x34   :  { %777 = dma.done.wait [#allocation3], 32  }
  0x35   :  { %778 = vsyncadd [#allocation3], 4294967264 }
  0x36   :  { %779 = dma.done.wait [#allocation6], 6144  }
  0x37   :  { %780 = vsyncadd [#allocation6], 4294961152  ;;  %v621_v0 = vld [vmem:[#allocation5 + $0x4] ss:$8 sps:$4 sm:$0xff]   ;;  %v623_v1 = vld [vmem:[#allocation5] ss:$8 sps:$4 sm:$0xff]   ;;  %v96_v9 = vlaneseq }
  0x38   :  { %291 = vmatprep.subr.bf16.mxu0 %v621_v0  ;;  %v624_v2 = vld [vmem:[#allocation5 + $0x14] ss:$8 sps:$4 sm:$0xff]   ;;  %v626_v3 = vld [vmem:[#allocation5 + $0x10] ss:$8 sps:$4 sm:$0xff]   ;;  %v627_v4 = vld [vmem:[#allocation5 + $0x24] ss:$8 sps:$4 sm:$0xff]  }
  0x39   :  { %292 = vmatpush1.bf16.msra.mxu0 %v623_v1  ;;  %v629_v5 = vld [vmem:[#allocation5 + $0x20] ss:$8 sps:$4 sm:$0xff]   ;;  %v630_v6 = vld [vmem:[#allocation5 + $0x34] ss:$8 sps:$4 sm:$0xff]   ;;  %v632_v7 = vld [vmem:[#allocation5 + $0x30] ss:$8 sps:$4 sm:$0xff]  }
  0x3a   :  { %293 = vmatprep.subr.bf16.mxu0 %v624_v2  ;;  %v633_v8 = vld [vmem:[#allocation5 + $0x44] ss:$8 sps:$4 sm:$0xff]   ;;  %v790_v10 = vmov 1966171168   ;;  %v635_v12 = vld [vmem:[#allocation5 + $0x40] ss:$8 sps:$4 sm:$0xff]  }
  0x3b   :  { %v116_v11 = vunpack.c.l.s4 %v790_v10  ;;  %v636_v13 = vld [vmem:[#allocation5 + $0x54] ss:$8 sps:$4 sm:$0xff]   ;;  %v858_v14 = vshrl.u32 %v96_v9, 7  ;;  %v638_v16 = vld [vmem:[#allocation5 + $0x50] ss:$8 sps:$4 sm:$0xff]   ;;  %v669_v23 = vld [vmem:[#allocation7 + $0x40] sm:$0xff]  }
  0x3c   :  { %v639_v17 = vld [vmem:[#allocation5 + $0x64] ss:$8 sps:$4 sm:$0xff]   ;;  %v641_v19 = vld [vmem:[#allocation5 + $0x60] ss:$8 sps:$4 sm:$0xff]   ;;  %v642_v21 = vld [vmem:[#allocation5 + $0x74] ss:$8 sps:$4 sm:$0xff]   ;;  %590 = vmatprep.subr.bf16.mxu1 %v669_v23 }
  0x3d   :  { %294 = vmatpush1.bf16.msra.mxu0 %v626_v3  ;;  %v117_v15 = vunpack.c.0.s8 %v116_v11  ;;  %v863_v20 = vld.sshfl [vmem:[#allocation2] sm:$0x11 pattern:$0x75316420]  ;;  %v670_v24 = vld [vmem:[#allocation7] sm:$0xff]   ;;  %v671_v26 = vld [vmem:[#allocation7 + $0x48] sm:$0xff]  }
  0x3e   :  { %295 = vmatprep.subr.bf16.mxu0 %v627_v4  ;;  %v114_v22 = vcombine.high %v863_v20, %v863_v20  ;;  %591 = vmatpush3.bf16.msra.mxu1 %v670_v24  ;;  %v672_v27 = vld [vmem:[#allocation7 + $0x8] sm:$0xff]   ;;  %v673_v28 = vld [vmem:[#allocation7 + $0x50] sm:$0xff]   ;;  %v675_v32 = vld [vmem:[#allocation7 + $0x58] sm:$0xff]   ;;  %v98_v58 = vsub.s32 0, %v858_v14  ;;  %v102_v60 = vsub.s32 1, %v858_v14  ;;  %vm511_vm0 = vcmask 1041408  }
  0x3f   :  { %v861_v18 = vsub.s32 %v117_v15, %v858_v14  ;;  %592 = vmatprep.subr.bf16.mxu1 %v671_v26  ;;  %v644_v29 = vld [vmem:[#allocation5 + $0x70] ss:$8 sps:$4 sm:$0xff]   ;;  %v645_v30 = vld [vmem:[#allocation5 + $0x84] ss:$8 sps:$4 sm:$0xff]   ;;  %v647_v33 = vld [vmem:[#allocation5 + $0x80] ss:$8 sps:$4 sm:$0xff]  }
  0x40   :  { %v674_v31 = vld [vmem:[#allocation7 + $0x10] sm:$0xff]   ;;  %v676_v36 = vld [vmem:[#allocation7 + $0x18] sm:$0xff]   ;;  %v651_v37 = vld [vmem:[#allocation5 + $0xa4] ss:$8 sps:$4 sm:$0xff]   ;;  %s791_s8 = smov [#allocation8]  }
  0x41   :  { %296 = vmatpush1.bf16.msra.mxu0 %v629_v5  ;;  %v128_v25 = vrot.slane %v114_v22, %v861_v18  ;;  %v648_v34 = vld [vmem:[#allocation5 + $0x94] ss:$8 sps:$4 sm:$0xff]   ;;  %v650_v35 = vld [vmem:[#allocation5 + $0x90] ss:$8 sps:$4 sm:$0xff]   ;;  %v677_v38 = vld [vmem:[#allocation7 + $0x60] sm:$0xff]   ;;  %v121_v53 = vrot.slane %v863_v20, %v861_v18  ;;  %s530_s9 = sshll.u32 %s791_s8, 4  ;;  %s531_s9 = int_to_ptr.vmem [resolvable:$true] %s530_s9 }
  0x42   :  { %297 = vmatprep.subr.bf16.mxu0 %v630_v6  ;;  %593 = vmatpush3.bf16.msra.mxu1 %v672_v27  ;;  %v678_v39 = vld [vmem:[#allocation7 + $0x20] sm:$0xff]   ;;  %v679_v40 = vld [vmem:[#allocation7 + $0x68] sm:$0xff]   ;;  %v654_v42 = vld [vmem:[#allocation5 + $0xb4] ss:$8 sps:$4 sm:$0xff]   ;;  %p760_p11 = scmp.lt.s32.totalorder %s531_s9, %s531_s9 }
  0x43   :  { %323 = vmatprep.mubr.bf16.mxu0 %v128_v25  ;;  %594 = vmatprep.subr.bf16.mxu1 %v673_v28  ;;  %v653_v41 = vld [vmem:[#allocation5 + $0xa0] ss:$8 sps:$4 sm:$0xff]   ;;  %v656_v44 = vld [vmem:[#allocation5 + $0xb0] ss:$8 sps:$4 sm:$0xff]   ;;  %v657_v45 = vld [vmem:[#allocation5 + $0xc4] ss:$8 sps:$4 sm:$0xff]  }
  0x44   :  { %v680_v43 = vld [vmem:[#allocation7 + $0x28] sm:$0xff]   ;;  %v660_v47 = vld [vmem:[#allocation5 + $0xd4] ss:$8 sps:$4 sm:$0xff]   ;;  %v662_v48 = vld [vmem:[#allocation5 + $0xd0] ss:$8 sps:$4 sm:$0xff]  }
  0x45   :  { %298 = vmatpush1.bf16.msra.mxu0 %v632_v7  ;;  %v659_v46 = vld [vmem:[#allocation5 + $0xc0] ss:$8 sps:$4 sm:$0xff]   ;;  %v663_v49 = vld [vmem:[#allocation5 + $0xe4] ss:$8 sps:$4 sm:$0xff]   ;;  %v666_v51 = vld [vmem:[#allocation5 + $0xf4] ss:$8 sps:$4 sm:$0xff]  }
  0x46   :  { %299 = vmatprep.subr.bf16.mxu0 %v633_v8  ;;  %595 = vmatpush3.bf16.msra.mxu1 %v674_v31  ;;  %v665_v50 = vld [vmem:[#allocation5 + $0xe0] ss:$8 sps:$4 sm:$0xff]   ;;  %v668_v52 = vld [vmem:[#allocation5 + $0xf0] ss:$8 sps:$4 sm:$0xff]   ;;  %v94_v59 = vld [vmem:[%s892_s2] sm:$0x3] }
  0x47   :  { %596 = vmatprep.subr.bf16.mxu1 %v675_v32  ;;  %v681_v54 = vld [vmem:[#allocation7 + $0x70] sm:$0xff]   ;;  %v683_v56 = vld [vmem:[#allocation7 + $0x78] sm:$0xff]   ;;  %v99_v61 = vrot.slane %v94_v59, %v98_v58  ;;  %v103_v62 = vrot.slane %v94_v59, %v102_v60 }
  0x48   :  { %v682_v55 = vld [vmem:[#allocation7 + $0x30] sm:$0xff]   ;;  %v684_v57 = vld [vmem:[#allocation7 + $0x38] sm:$0xff]  }
  0x49   :  { %300 = vmatpush1.bf16.msra.mxu0 %v635_v12  ;;  %v573_v11 = vld [vmem:[%s894_s4] ss:$0 sm:$0xff]  ;;  %s755_s4 = scalar_lea.vmem %s531_s9, 32 }
  0x4a   :  { %301 = vmatprep.subr.bf16.mxu0 %v636_v13  ;;  %597 = vmatpush3.bf16.msra.mxu1 %v676_v36  ;;  %p756_p10 = scmp.ne.s32.totalorder %s531_s9, %s755_s4  ;;  %p761_p12 = scmp.lt.s32.totalorder %s755_s4, %s755_s4 }
  0x4b   :  { %598 = vmatprep.subr.bf16.mxu1 %v677_v38 }
  0x4c   :  { %p762_p13 = por %p761_p12, %p760_p11 }
  0x4d   :  { %302 = vmatpush1.bf16.msra.mxu0 %v638_v16 }
  0x4e   :  { %303 = vmatprep.subr.bf16.mxu0 %v639_v17  ;;  %599 = vmatpush3.bf16.msra.mxu1 %v678_v39  ;;  %p763_p0 = pnand %p762_p13, %p756_p10 }
  0x4f   :  { %600 = vmatprep.subr.bf16.mxu1 %v679_v40 }
  0x51   :  { %304 = vmatpush1.bf16.msra.mxu0 %v641_v19 }
  0x52   :  { %305 = vmatprep.subr.bf16.mxu0 %v642_v21  ;;  %601 = vmatpush3.bf16.msra.mxu1 %v680_v43 }
  0x53   :  { %602 = vmatprep.subr.bf16.mxu1 %v681_v54 }
  0x55   :  { %306 = vmatpush1.bf16.msra.mxu0 %v644_v29 }
  0x56   :  { %307 = vmatprep.subr.bf16.mxu0 %v645_v30  ;;  %603 = vmatpush3.bf16.msra.mxu1 %v682_v55 }
  0x57   :  { %604 = vmatprep.subr.bf16.mxu1 %v683_v56 }
  0x59   :  { %308 = vmatpush1.bf16.msra.mxu0 %v647_v33 }
  0x5a   :  { %309 = vmatprep.subr.bf16.mxu0 %v648_v34  ;;  %605 = vmatpush3.bf16.msra.mxu1 %v684_v57 }
  0x5d   :  { %310 = vmatpush1.bf16.msra.mxu0 %v650_v35 }
  0x5e   :  { %311 = vmatprep.subr.bf16.mxu0 %v651_v37 }
  0x61   :  { %312 = vmatpush1.bf16.msra.mxu0 %v653_v41 }
  0x62   :  { %313 = vmatprep.subr.bf16.mxu0 %v654_v42 }
  0x65   :  { %314 = vmatpush1.bf16.msra.mxu0 %v656_v44 }
  0x66   :  { %315 = vmatprep.subr.bf16.mxu0 %v657_v45 }
  0x69   :  { %316 = vmatpush1.bf16.msra.mxu0 %v659_v46 }
  0x6a   :  { %317 = vmatprep.subr.bf16.mxu0 %v660_v47 }
  0x6d   :  { %318 = vmatpush1.bf16.msra.mxu0 %v662_v48 }
  0x6e   :  { %319 = vmatprep.subr.bf16.mxu0 %v663_v49 }
  0x71   :  { %320 = vmatpush1.bf16.msra.mxu0 %v665_v50 }
  0x72   :  { %321 = vmatprep.subr.bf16.mxu0 %v666_v51 }
  0x75   :  { %322 = vmatpush1.bf16.msra.mxu0 %v668_v52 }
  0x78   :  { %324 = vmatmul.mubr.bf16.vlgmr.msra.gmra.mrb[0].mxu0 %v121_v53 }
 0x14b   :  { %v325_v63 = vpop.f32.mrb[0].mxu0 }
 0x14c   :  { %v326_v0 = vadd.f32 %v325_v63, %v99_v61  ;;  %v327_v1 = vpop.f32.mrb[1].mxu0 }
 0x14d   :  { %v328_v2 = vadd.f32 %v327_v1, %v103_v62  ;;  %v329_v3 = vpop.f32.mrb[2].mxu0 }
 0x14e   :  { %v332_v4 = vmax.f32 %v326_v0, 0.0  ;;  %v330_v5 = vpop.f32.mrb[3].mxu0 }
 0x14f   :  { %v333_v6 = vmax.f32 %v328_v2, 0.0 }
 0x150   :  { %v334_v8 = vpack.c.bf16 %v332_v4, %v332_v4 }
 0x151   :  { %v335_v7 = vpack.c.bf16 %v333_v6, %v333_v6 }
 0x153   :  { %503 = vmatprep.mubr.bf16.mxu1 %v335_v7 }
 0x154   :  { %504 = vmatmul.mubr.bf16.vlgmr.msra.gmra.mrb[0].mxu1 %v334_v8 }
 0x227   :  { %v606_v9 = vpop.f32.mrb[0].mxu1 }
 0x228   :  { %v607_v10 = vpop.f32.mrb[1].mxu1 }
 0x229   :  { %v608_v12 = vadd.f32 %v607_v10, %v606_v9  ;;  %v609_v13 = vpop.f32.mrb[2].mxu1 }
 0x22a   :  { %v610_v14 = vpop.f32.mrb[3].mxu1 }
 0x22b   :  { %v506_v15 = vadd.f32 %v608_v12, %v573_v11 }
 0x22d   :  { %v512_v16 = vsel %vm511_vm0, %v506_v15, -inf }
 0x22e   :  { %513 = vmax.xlane.f32.xlu0 %v512_v16 }
 0x2bb   :  { %v514_v17 = vpop.xlane.xlu0 %513 }
 0x2bc   :  { %v515_v18 = vsub.f32 %v506_v15, %v514_v17 }
 0x2be   :  { %v516_v19 = vmul.f32 1.442695, %v515_v18 }
 0x2c0   :  { %685 = vpow2.f32 %v516_v19 }
 0x2ca   :  { %v686_v20 = vpop.eup %685 }
 0x2cb   :  { %v518_v21 = vsel %vm511_vm0, %v686_v20, 0.0 }
 0x2cc   :  { %519 = vadd.xlane.f32.xlu0 %v518_v21 }
 0x359   :  { %v520_v22 = vpop.xlane.xlu0 %519 }
 0x35a   :  { %687 = vrcp.f32 %v520_v22 }
 0x364   :  { %v688_v23 = vpop.eup %687 }
 0x365   :  { %v522_v24 = vmul.f32 %v688_v23, %v686_v20 }
 0x367   :  { %523 = vst [vmem:[#allocation8] sm:$0x3] %v522_v24 }
 0x368   :  { %766 = shalt.err (!%p763_p0)
}
 0x369   :  { %s767_s12 = scalar_lea.hbm %s895_s5, 32 }
 0x36a   :  { %p768_p1 = scmp.ne.s32.totalorder %s895_s5, %s767_s12  ;;  %p771_p2 = scmp.lt.u32.totalorder %s767_s12, %s895_s5 }
 0x36c   :  { %p773_p3 = pnand %p771_p2, %p768_p1 }
 0x36e   :  { %776 = shalt.err (!%p773_p3)
}
 0x36f   :  { %533 = dma.vmem_to_hbm [thread:$0]  %s531_s9, 32, %s895_s5, [#allocation4]  }
 0x370   :  { %781 = dma.done.wait [#allocation4], 32  }
 0x371   :  { %782 = vsyncadd [#allocation4], 4294967264 }
 0x372   :  { %537 = vsyncpa [#allocation3], 1 }
 0x373   :  { %538 = vsyncpa [#allocation6], 1 }
 0x374   :  { %539 = vsyncpa [#allocation4], 1 }

// kernel: tpu_custom_call.1
= control target key start
LH: loop header
LB: loop body
LE: loop exit
PB: predicated region body
PF: predicated region fallthrough
CT: control target
= control target key end

     0   :  { %10 = vsyncpa [#allocation3], 0  ;;  %s890_s0 = inlined_call_operand.hbm [shape: bf16[2,256], index: 0, kind: input, shape index: {}]   ;;  %s891_s1 = inlined_call_operand.hbm [shape: bf16[256,256], index: 1, kind: input, shape index: {}]   ;;  %s892_s2 = inlined_call_operand.vmem [shape: f32[1,256], index: 2, kind: input, shape index: {}]   ;;  %s893_s3 = inlined_call_operand.hbm [shape: bf16[256,128], index: 3, kind: input, shape index: {}]   ;;  %s894_s4 = inlined_call_operand.vmem [shape: f32[1,128], index: 4, kind: input, shape index: {}]   ;;  %s895_s5 = inlined_call_operand.hbm [shape: f32[2,128], index: 5, kind: output, shape index: {}]  }
   0x1   :  { %11 = vsyncpa [#allocation6], 0 }
   0x2   :  { %12 = vsyncpa [#allocation4], 0  ;;  %s783_s18 = smov [#allocation5]   ;;  %s689_s22 = scalar_lea.hbm %s891_s1, 4096 }
   0x3   :  { %s28_s19 = sshll.u32 %s783_s18, 4  ;;  %p690_p0 = scmp.ne.s32.totalorder %s891_s1, %s689_s22  ;;  %s29_s19 = int_to_ptr.vmem [resolvable:$true] %s28_s19 }
   0x4   :  { %p693_p1 = scmp.lt.u32.totalorder %s689_s22, %s891_s1 }
   0x6   :  { %p695_p2 = pnand %p693_p1, %p690_p0 }
   0x8   :  { %698 = shalt.err (!%p695_p2)
}
   0x9   :  { %s699_s27 = scalar_lea.vmem %s29_s19, 4096  ;;  %p704_p4 = scmp.lt.s32.totalorder %s29_s19, %s29_s19 }
   0xa   :  { %p700_p3 = scmp.ne.s32.totalorder %s29_s19, %s699_s27  ;;  %p705_p5 = scmp.lt.s32.totalorder %s699_s27, %s699_s27 }
   0xc   :  { %p706_p6 = por %p705_p5, %p704_p4 }
   0xe   :  { %p707_p7 = pnand %p706_p6, %p700_p3 }
  0x10   :  { %710 = shalt.err (!%p707_p7)
}
  0x11   :  { %s784_s28 = smov 128   ;;  %s785_s29 = smov 8  }
  0x12   :  { %34 = dma.hbm_to_vmem [thread:$0]  %s891_s1, 4096, %s29_s19, [#allocation6], %s784_s28, %s784_s28, %s785_s29  }
  0x13   :  { %s786_s7 = smov [#allocation2]   ;;  %s787_s9 = smov [#allocation7]  }
  0x14   :  { %s19_s8 = sshll.u32 %s786_s7, 4  ;;  %s42_s10 = sshll.u32 %s787_s9, 4  ;;  %s20_s8 = int_to_ptr.vmem [resolvable:$true] %s19_s8  ;;  %s43_s10 = int_to_ptr.vmem [resolvable:$true] %s42_s10 }
  0x15   :  { %s711_s13 = scalar_lea.hbm %s890_s0, 32 }
  0x16   :  { %p712_p8 = scmp.ne.s32.totalorder %s890_s0, %s711_s13  ;;  %p715_p9 = scmp.lt.u32.totalorder %s711_s13, %s890_s0 }
  0x18   :  { %p717_p10 = pnand %p715_p9, %p712_p8 }
  0x1a   :  { %720 = shalt.err (!%p717_p10)
}
  0x1b   :  { %s721_s1 = scalar_lea.vmem %s20_s8, 32  ;;  %p726_p12 = scmp.lt.s32.totalorder %s20_s8, %s20_s8 }
  0x1c   :  { %p722_p11 = scmp.ne.s32.totalorder %s20_s8, %s721_s1  ;;  %p727_p13 = scmp.lt.s32.totalorder %s721_s1, %s721_s1 }
  0x1e   :  { %p728_p0 = por %p727_p13, %p726_p12 }
  0x20   :  { %p729_p1 = pnand %p728_p0, %p722_p11 }
  0x22   :  { %732 = shalt.err (!%p729_p1)
}
  0x23   :  { %22 = dma.hbm_to_vmem [thread:$0]  %s890_s0, 32, %s20_s8, [#allocation3]  }
  0x24   :  { %s733_s22 = scalar_lea.hbm %s893_s3, 2048 }
  0x25   :  { %p734_p2 = scmp.ne.s32.totalorder %s893_s3, %s733_s22  ;;  %p737_p3 = scmp.lt.u32.totalorder %s733_s22, %s893_s3 }
  0x27   :  { %p739_p4 = pnand %p737_p3, %p734_p2 }
  0x29   :  { %742 = shalt.err (!%p739_p4)
}
  0x2a   :  { %s743_s27 = scalar_lea.vmem %s43_s10, 2048  ;;  %p748_p6 = scmp.lt.s32.totalorder %s43_s10, %s43_s10 }
  0x2b   :  { %p744_p5 = scmp.ne.s32.totalorder %s43_s10, %s743_s27  ;;  %p749_p7 = scmp.lt.s32.totalorder %s743_s27, %s743_s27 }
  0x2d   :  { %p750_p8 = por %p749_p7, %p748_p6 }
  0x2f   :  { %p751_p9 = pnand %p750_p8, %p744_p5 }
  0x31   :  { %754 = shalt.err (!%p751_p9)
}
  0x32   :  { %s788_s0 = smov 64   ;;  %s789_s28 = smov 4  }
  0x33   :  { %48 = dma.hbm_to_vmem [thread:$0]  %s893_s3, 2048, %s43_s10, [#allocation6], %s788_s0, %s788_s0, %s789_s28  }
  0x34   :  { %777 = dma.done.wait [#allocation3], 32  }
  0x35   :  { %778 = vsyncadd [#allocation3], 4294967264 }
  0x36   :  { %779 = dma.done.wait [#allocation6], 6144  }
  0x37   :  { %780 = vsyncadd [#allocation6], 4294961152  ;;  %v621_v0 = vld [vmem:[#allocation5 + $0x4] ss:$8 sps:$4 sm:$0xff]   ;;  %v623_v1 = vld [vmem:[#allocation5] ss:$8 sps:$4 sm:$0xff]   ;;  %v96_v9 = vlaneseq }
  0x38   :  { %291 = vmatprep.subr.bf16.mxu0 %v621_v0  ;;  %v624_v2 = vld [vmem:[#allocation5 + $0x14] ss:$8 sps:$4 sm:$0xff]   ;;  %v626_v3 = vld [vmem:[#allocation5 + $0x10] ss:$8 sps:$4 sm:$0xff]   ;;  %v627_v4 = vld [vmem:[#allocation5 + $0x24] ss:$8 sps:$4 sm:$0xff]  }
  0x39   :  { %292 = vmatpush1.bf16.msra.mxu0 %v623_v1  ;;  %v629_v5 = vld [vmem:[#allocation5 + $0x20] ss:$8 sps:$4 sm:$0xff]   ;;  %v630_v6 = vld [vmem:[#allocation5 + $0x34] ss:$8 sps:$4 sm:$0xff]   ;;  %v632_v7 = vld [vmem:[#allocation5 + $0x30] ss:$8 sps:$4 sm:$0xff]  }
  0x3a   :  { %293 = vmatprep.subr.bf16.mxu0 %v624_v2  ;;  %v633_v8 = vld [vmem:[#allocation5 + $0x44] ss:$8 sps:$4 sm:$0xff]   ;;  %v790_v10 = vmov 1966171168   ;;  %v635_v12 = vld [vmem:[#allocation5 + $0x40] ss:$8 sps:$4 sm:$0xff]  }
  0x3b   :  { %v116_v11 = vunpack.c.l.s4 %v790_v10  ;;  %v636_v13 = vld [vmem:[#allocation5 + $0x54] ss:$8 sps:$4 sm:$0xff]   ;;  %v858_v14 = vshrl.u32 %v96_v9, 7  ;;  %v638_v16 = vld [vmem:[#allocation5 + $0x50] ss:$8 sps:$4 sm:$0xff]   ;;  %v669_v23 = vld [vmem:[#allocation7 + $0x40] sm:$0xff]  }
  0x3c   :  { %v639_v17 = vld [vmem:[#allocation5 + $0x64] ss:$8 sps:$4 sm:$0xff]   ;;  %v641_v19 = vld [vmem:[#allocation5 + $0x60] ss:$8 sps:$4 sm:$0xff]   ;;  %v642_v21 = vld [vmem:[#allocation5 + $0x74] ss:$8 sps:$4 sm:$0xff]   ;;  %590 = vmatprep.subr.bf16.mxu1 %v669_v23 }
  0x3d   :  { %294 = vmatpush1.bf16.msra.mxu0 %v626_v3  ;;  %v117_v15 = vunpack.c.0.s8 %v116_v11  ;;  %v863_v20 = vld.sshfl [vmem:[#allocation2] sm:$0x11 pattern:$0x75316420]  ;;  %v670_v24 = vld [vmem:[#allocation7] sm:$0xff]   ;;  %v671_v26 = vld [vmem:[#allocation7 + $0x48] sm:$0xff]  }
  0x3e   :  { %295 = vmatprep.subr.bf16.mxu0 %v627_v4  ;;  %v114_v22 = vcombine.high %v863_v20, %v863_v20  ;;  %591 = vmatpush3.bf16.msra.mxu1 %v670_v24  ;;  %v672_v27 = vld [vmem:[#allocation7 + $0x8] sm:$0xff]   ;;  %v673_v28 = vld [vmem:[#allocation7 + $0x50] sm:$0xff]   ;;  %v675_v32 = vld [vmem:[#allocation7 + $0x58] sm:$0xff]   ;;  %v98_v58 = vsub.s32 0, %v858_v14  ;;  %v102_v60 = vsub.s32 1, %v858_v14  ;;  %vm511_vm0 = vcmask 1041408  }
  0x3f   :  { %v861_v18 = vsub.s32 %v117_v15, %v858_v14  ;;  %592 = vmatprep.subr.bf16.mxu1 %v671_v26  ;;  %v644_v29 = vld [vmem:[#allocation5 + $0x70] ss:$8 sps:$4 sm:$0xff]   ;;  %v645_v30 = vld [vmem:[#allocation5 + $0x84] ss:$8 sps:$4 sm:$0xff]   ;;  %v647_v33 = vld [vmem:[#allocation5 + $0x80] ss:$8 sps:$4 sm:$0xff]  }
  0x40   :  { %v674_v31 = vld [vmem:[#allocation7 + $0x10] sm:$0xff]   ;;  %v676_v36 = vld [vmem:[#allocation7 + $0x18] sm:$0xff]   ;;  %v651_v37 = vld [vmem:[#allocation5 + $0xa4] ss:$8 sps:$4 sm:$0xff]   ;;  %s791_s8 = smov [#allocation8]  }
  0x41   :  { %296 = vmatpush1.bf16.msra.mxu0 %v629_v5  ;;  %v128_v25 = vrot.slane %v114_v22, %v861_v18  ;;  %v648_v34 = vld [vmem:[#allocation5 + $0x94] ss:$8 sps:$4 sm:$0xff]   ;;  %v650_v35 = vld [vmem:[#allocation5 + $0x90] ss:$8 sps:$4 sm:$0xff]   ;;  %v677_v38 = vld [vmem:[#allocation7 + $0x60] sm:$0xff]   ;;  %v121_v53 = vrot.slane %v863_v20, %v861_v18  ;;  %s530_s9 = sshll.u32 %s791_s8, 4  ;;  %s531_s9 = int_to_ptr.vmem [resolvable:$true] %s530_s9 }
  0x42   :  { %297 = vmatprep.subr.bf16.mxu0 %v630_v6  ;;  %593 = vmatpush3.bf16.msra.mxu1 %v672_v27  ;;  %v678_v39 = vld [vmem:[#allocation7 + $0x20] sm:$0xff]   ;;  %v679_v40 = vld [vmem:[#allocation7 + $0x68] sm:$0xff]   ;;  %v654_v42 = vld [vmem:[#allocation5 + $0xb4] ss:$8 sps:$4 sm:$0xff]   ;;  %p760_p11 = scmp.lt.s32.totalorder %s531_s9, %s531_s9 }
  0x43   :  { %323 = vmatprep.mubr.bf16.mxu0 %v128_v25  ;;  %594 = vmatprep.subr.bf16.mxu1 %v673_v28  ;;  %v653_v41 = vld [vmem:[#allocation5 + $0xa0] ss:$8 sps:$4 sm:$0xff]   ;;  %v656_v44 = vld [vmem:[#allocation5 + $0xb0] ss:$8 sps:$4 sm:$0xff]   ;;  %v657_v45 = vld [vmem:[#allocation5 + $0xc4] ss:$8 sps:$4 sm:$0xff]  }
  0x44   :  { %v680_v43 = vld [vmem:[#allocation7 + $0x28] sm:$0xff]   ;;  %v660_v47 = vld [vmem:[#allocation5 + $0xd4] ss:$8 sps:$4 sm:$0xff]   ;;  %v662_v48 = vld [vmem:[#allocation5 + $0xd0] ss:$8 sps:$4 sm:$0xff]  }
  0x45   :  { %298 = vmatpush1.bf16.msra.mxu0 %v632_v7  ;;  %v659_v46 = vld [vmem:[#allocation5 + $0xc0] ss:$8 sps:$4 sm:$0xff]   ;;  %v663_v49 = vld [vmem:[#allocation5 + $0xe4] ss:$8 sps:$4 sm:$0xff]   ;;  %v666_v51 = vld [vmem:[#allocation5 + $0xf4] ss:$8 sps:$4 sm:$0xff]  }
  0x46   :  { %299 = vmatprep.subr.bf16.mxu0 %v633_v8  ;;  %595 = vmatpush3.bf16.msra.mxu1 %v674_v31  ;;  %v665_v50 = vld [vmem:[#allocation5 + $0xe0] ss:$8 sps:$4 sm:$0xff]   ;;  %v668_v52 = vld [vmem:[#allocation5 + $0xf0] ss:$8 sps:$4 sm:$0xff]   ;;  %v94_v59 = vld [vmem:[%s892_s2] sm:$0x3] }
  0x47   :  { %596 = vmatprep.subr.bf16.mxu1 %v675_v32  ;;  %v681_v54 = vld [vmem:[#allocation7 + $0x70] sm:$0xff]   ;;  %v683_v56 = vld [vmem:[#allocation7 + $0x78] sm:$0xff]   ;;  %v99_v61 = vrot.slane %v94_v59, %v98_v58  ;;  %v103_v62 = vrot.slane %v94_v59, %v102_v60 }
  0x48   :  { %v682_v55 = vld [vmem:[#allocation7 + $0x30] sm:$0xff]   ;;  %v684_v57 = vld [vmem:[#allocation7 + $0x38] sm:$0xff]  }
  0x49   :  { %300 = vmatpush1.bf16.msra.mxu0 %v635_v12  ;;  %v573_v11 = vld [vmem:[%s894_s4] ss:$0 sm:$0xff]  ;;  %s755_s4 = scalar_lea.vmem %s531_s9, 32 }
  0x4a   :  { %301 = vmatprep.subr.bf16.mxu0 %v636_v13  ;;  %597 = vmatpush3.bf16.msra.mxu1 %v676_v36  ;;  %p756_p10 = scmp.ne.s32.totalorder %s531_s9, %s755_s4  ;;  %p761_p12 = scmp.lt.s32.totalorder %s755_s4, %s755_s4 }
  0x4b   :  { %598 = vmatprep.subr.bf16.mxu1 %v677_v38 }
  0x4c   :  { %p762_p13 = por %p761_p12, %p760_p11 }
  0x4d   :  { %302 = vmatpush1.bf16.msra.mxu0 %v638_v16 }
  0x4e   :  { %303 = vmatprep.subr.bf16.mxu0 %v639_v17  ;;  %599 = vmatpush3.bf16.msra.mxu1 %v678_v39  ;;  %p763_p0 = pnand %p762_p13, %p756_p10 }
  0x4f   :  { %600 = vmatprep.subr.bf16.mxu1 %v679_v40 }
  0x51   :  { %304 = vmatpush1.bf16.msra.mxu0 %v641_v19 }
  0x52   :  { %305 = vmatprep.subr.bf16.mxu0 %v642_v21  ;;  %601 = vmatpush3.bf16.msra.mxu1 %v680_v43 }
  0x53   :  { %602 = vmatprep.subr.bf16.mxu1 %v681_v54 }
  0x55   :  { %306 = vmatpush1.bf16.msra.mxu0 %v644_v29 }
  0x56   :  { %307 = vmatprep.subr.bf16.mxu0 %v645_v30  ;;  %603 = vmatpush3.bf16.msra.mxu1 %v682_v55 }
  0x57   :  { %604 = vmatprep.subr.bf16.mxu1 %v683_v56 }
  0x59   :  { %308 = vmatpush1.bf16.msra.mxu0 %v647_v33 }
  0x5a   :  { %309 = vmatprep.subr.bf16.mxu0 %v648_v34  ;;  %605 = vmatpush3.bf16.msra.mxu1 %v684_v57 }
  0x5d   :  { %310 = vmatpush1.bf16.msra.mxu0 %v650_v35 }
  0x5e   :  { %311 = vmatprep.subr.bf16.mxu0 %v651_v37 }
  0x61   :  { %312 = vmatpush1.bf16.msra.mxu0 %v653_v41 }
  0x62   :  { %313 = vmatprep.subr.bf16.mxu0 %v654_v42 }
  0x65   :  { %314 = vmatpush1.bf16.msra.mxu0 %v656_v44 }
  0x66   :  { %315 = vmatprep.subr.bf16.mxu0 %v657_v45 }
  0x69   :  { %316 = vmatpush1.bf16.msra.mxu0 %v659_v46 }
  0x6a   :  { %317 = vmatprep.subr.bf16.mxu0 %v660_v47 }
  0x6d   :  { %318 = vmatpush1.bf16.msra.mxu0 %v662_v48 }
  0x6e   :  { %319 = vmatprep.subr.bf16.mxu0 %v663_v49 }
  0x71   :  { %320 = vmatpush1.bf16.msra.mxu0 %v665_v50 }
  0x72   :  { %321 = vmatprep.subr.bf16.mxu0 %v666_v51 }
  0x75   :  { %322 = vmatpush1.bf16.msra.mxu0 %v668_v52 }
  0x78   :  { %324 = vmatmul.mubr.bf16.vlgmr.msra.gmra.mrb[0].mxu0 %v121_v53 }
 0x14b   :  { %v325_v63 = vpop.f32.mrb[0].mxu0 }
 0x14c   :  { %v326_v0 = vadd.f32 %v325_v63, %v99_v61  ;;  %v327_v1 = vpop.f32.mrb[1].mxu0 }
 0x14d   :  { %v328_v2 = vadd.f32 %v327_v1, %v103_v62  ;;  %v329_v3 = vpop.f32.mrb[2].mxu0 }
 0x14e   :  { %v332_v4 = vmax.f32 %v326_v0, 0.0  ;;  %v330_v5 = vpop.f32.mrb[3].mxu0 }
 0x14f   :  { %v333_v6 = vmax.f32 %v328_v2, 0.0 }
 0x150   :  { %v334_v8 = vpack.c.bf16 %v332_v4, %v332_v4 }
 0x151   :  { %v335_v7 = vpack.c.bf16 %v333_v6, %v333_v6 }
 0x153   :  { %503 = vmatprep.mubr.bf16.mxu1 %v335_v7 }
 0x154   :  { %504 = vmatmul.mubr.bf16.vlgmr.msra.gmra.mrb[0].mxu1 %v334_v8 }
 0x227   :  { %v606_v9 = vpop.f32.mrb[0].mxu1 }
 0x228   :  { %v607_v10 = vpop.f32.mrb[1].mxu1 }
 0x229   :  { %v608_v12 = vadd.f32 %v607_v10, %v606_v9  ;;  %v609_v13 = vpop.f32.mrb[2].mxu1 }
 0x22a   :  { %v610_v14 = vpop.f32.mrb[3].mxu1 }
 0x22b   :  { %v506_v15 = vadd.f32 %v608_v12, %v573_v11 }
 0x22d   :  { %v512_v16 = vsel %vm511_vm0, %v506_v15, -inf }
 0x22e   :  { %513 = vmax.xlane.f32.xlu0 %v512_v16 }
 0x2bb   :  { %v514_v17 = vpop.xlane.xlu0 %513 }
 0x2bc   :  { %v515_v18 = vsub.f32 %v506_v15, %v514_v17 }
 0x2be   :  { %v516_v19 = vmul.f32 1.442695, %v515_v18 }
 0x2c0   :  { %685 = vpow2.f32 %v516_v19 }
 0x2ca   :  { %v686_v20 = vpop.eup %685 }
 0x2cb   :  { %v518_v21 = vsel %vm511_vm0, %v686_v20, 0.0 }
 0x2cc   :  { %519 = vadd.xlane.f32.xlu0 %v518_v21 }
 0x359   :  { %v520_v22 = vpop.xlane.xlu0 %519 }
 0x35a   :  { %687 = vrcp.f32 %v520_v22 }
 0x364   :  { %v688_v23 = vpop.eup %687 }
 0x365   :  { %v522_v24 = vmul.f32 %v688_v23, %v686_v20 }
 0x367   :  { %523 = vst [vmem:[#allocation8] sm:$0x3] %v522_v24 }
 0x368   :  { %766 = shalt.err (!%p763_p0)
}
 0x369   :  { %s767_s12 = scalar_lea.hbm %s895_s5, 32 }
 0x36a   :  { %p768_p1 = scmp.ne.s32.totalorder %s895_s5, %s767_s12  ;;  %p771_p2 = scmp.lt.u32.totalorder %s767_s12, %s895_s5 }
 0x36c   :  { %p773_p3 = pnand %p771_p2, %p768_p1 }
 0x36e   :  { %776 = shalt.err (!%p773_p3)
}
 0x36f   :  { %533 = dma.vmem_to_hbm [thread:$0]  %s531_s9, 32, %s895_s5, [#allocation4]  }
 0x370   :  { %781 = dma.done.wait [#allocation4], 32  }
 0x371   :  { %782 = vsyncadd [#allocation4], 4294967264 }
 0x372   :  { %537 = vsyncpa [#allocation3], 1 }
 0x373   :  { %538 = vsyncpa [#allocation6], 1 }
 0x374   :  { %539 = vsyncpa [#allocation4], 1 }

</bundles_post_ra>
